<compile_context>
chip_gen: v6e
topology: v6e:2x2x1
jax: 0.10.0
libtpu: 0.0.40
codegen_flags: <defaults>
</compile_context>

<pallas_src>
import functools

import jax
import jax.numpy as jnp
from jax.experimental import pallas as pl
from jax.experimental.pallas import tpu as pltpu

TILE_B = 512   # batch tile (sublane-aligned; tiny VMEM footprint, amortizes grid overhead)
LANE = 128     # lane width the output layer is padded to (lane-dense stores)


def _round_up(x, m):
    return ((x + m - 1) // m) * m


def _actor_kernel(obs_ref, w1_ref, b1_ref, w2_ref, b2_ref, w3_ref, b3_ref,
                  out_ref, *, act_limit):
    # MXU operands in bf16, accumulate in f32; elementwise/transcendental in f32.
    x = obs_ref[...].astype(jnp.bfloat16)

    h1 = jnp.dot(x, w1_ref[...], preferred_element_type=jnp.float32) + b1_ref[...]
    h1 = jnp.maximum(h1, 0.0)                                   # ReLU (f32, VPU)

    h2 = jnp.dot(h1.astype(jnp.bfloat16), w2_ref[...],
                 preferred_element_type=jnp.float32) + b2_ref[...]
    h2 = jnp.maximum(h2, 0.0)                                   # ReLU (f32, VPU)

    a = jnp.dot(h2.astype(jnp.bfloat16), w3_ref[...],
                preferred_element_type=jnp.float32) + b3_ref[...]
    a = jnp.tanh(a)                                             # Tanh (f32, EUP)

    out_ref[...] = (act_limit * a).astype(out_ref.dtype)        # lane-dense store


def mlp_actor_forward(obs, params, act_limit):
    """obs: (B, obs_dim) f32. params: dict of f32 w1,b1,w2,b2,w3,b3 ((in,out) layout).
    Returns (B, act_dim) f32."""
    B, obs_dim = obs.shape
    act_dim = params["w3"].shape[1]

    # Cast MXU operands (weights) to bf16; keep biases in f32.
    w1 = params["w1"].astype(jnp.bfloat16)
    w2 = params["w2"].astype(jnp.bfloat16)
    b1 = params["b1"].astype(jnp.float32)
    b2 = params["b2"].astype(jnp.float32)

    # Zero-pad the output layer to a lane-dense width (tanh(0)=0 in padded cols).
    n_out = _round_up(act_dim, LANE)
    w3 = jnp.pad(params["w3"], ((0, 0), (0, n_out - act_dim))).astype(jnp.bfloat16)
    b3 = jnp.pad(params["b3"], ((0, 0), (0, n_out - act_dim))).astype(jnp.float32)

    # Pad the batch to a multiple of the batch tile (small B -> one tile of >=8 rows).
    tile_b = min(TILE_B, _round_up(B, 8))
    B_total = _round_up(B, tile_b)
    obs_p = jnp.pad(obs, ((0, B_total - B), (0, 0))).astype(jnp.float32)
    nb = B_total // tile_b

    # Weights/biases: constant index_map -> stay VMEM-resident across grid steps.
    resident = lambda shape: pl.BlockSpec(shape, lambda i: tuple(0 for _ in shape))

    kernel = functools.partial(_actor_kernel, act_limit=float(act_limit))

    out_padded = pl.pallas_call(
        kernel,
        out_shape=jax.ShapeDtypeStruct((B_total, n_out), jnp.float32),
        grid_spec=pltpu.PrefetchScalarGridSpec(
            num_scalar_prefetch=0,
            grid=(nb,),
            in_specs=[
                pl.BlockSpec((tile_b, obs_dim), lambda i: (i, 0)),   # obs: pipelined
                resident(w1.shape), resident(b1.shape),
                resident(w2.shape), resident(b2.shape),
                resident(w3.shape), resident(b3.shape),
            ],
            out_specs=pl.BlockSpec((tile_b, n_out), lambda i: (i, 0)),
        ),
        compiler_params=pltpu.CompilerParams(
            dimension_semantics=("parallel",),   # v7x: shard batch across 2 TCs
        ),
    )(obs_p, w1, b1, w2, b2, w3, b3)

    return out_padded[:B, :act_dim]


def init_params(key, obs_dim, hidden_sizes, act_dim):
    """PyTorch-Linear-style init: U(-1/sqrt(fan_in), 1/sqrt(fan_in)); (in, out) layout."""
    sizes = [obs_dim] + list(hidden_sizes) + [act_dim]
    params = {}
    for j in range(len(sizes) - 1):
        fan_in, fan_out = sizes[j], sizes[j + 1]
        key, kw, kb = jax.random.split(key, 3)
        bound = 1.0 / jnp.sqrt(fan_in)
        params[f"w{j+1}"] = jax.random.uniform(
            kw, (fan_in, fan_out), jnp.float32, minval=-bound, maxval=bound)
        # biases kept 2D (1, out) so every kernel operand is >= 2D
        params[f"b{j+1}"] = jax.random.uniform(
            kb, (1, fan_out), jnp.float32, minval=-bound, maxval=bound)
    return params


if __name__ == "__main__":
    # Small shapes consistent with the module: obs_dim=16, hidden=(32, 32), act_dim=4
    B, obs_dim, act_dim = 2, 16, 4
    hidden_sizes = (32, 32)
    act_limit = 2.0

    key = jax.random.PRNGKey(0)
    key, kobs = jax.random.split(key)
    obs = jax.random.normal(kobs, (B, obs_dim), jnp.float32)
    params = init_params(key, obs_dim, hidden_sizes, act_dim)

    out = mlp_actor_forward(obs, params, act_limit)
    out = jax.block_until_ready(out)

    # Pure-JAX reference replicating the same bf16-operand / f32-accumulate math.
    w1b = params["w1"].astype(jnp.bfloat16)
    w2b = params["w2"].astype(jnp.bfloat16)
    w3b = params["w3"].astype(jnp.bfloat16)
    h1 = jnp.maximum(
        jnp.dot(obs.astype(jnp.bfloat16), w1b, preferred_element_type=jnp.float32)
        + params["b1"], 0.0)
    h2 = jnp.maximum(
        jnp.dot(h1.astype(jnp.bfloat16), w2b, preferred_element_type=jnp.float32)
        + params["b2"], 0.0)
    ref = act_limit * jnp.tanh(
        jnp.dot(h2.astype(jnp.bfloat16), w3b, preferred_element_type=jnp.float32)
        + params["b3"])

    assert out.shape == (B, act_dim)
    assert jnp.allclose(out, ref, atol=1e-4, rtol=1e-4), "mismatch vs reference"

    # Sanity vs the full-f32 reference as well (loose tolerance for bf16 weights).
    h = jnp.maximum(obs @ params["w1"] + params["b1"], 0.0)
    h = jnp.maximum(h @ params["w2"] + params["b2"], 0.0)
    ref_f32 = act_limit * jnp.tanh(h @ params["w3"] + params["b3"])
    assert jnp.allclose(out, ref_f32, atol=5e-2, rtol=5e-2), "mismatch vs f32 reference"

    print("KERNEL_OK")
</pallas_src>

<mosaic_0001>
module attributes {stable_mosaic.version = 11 : i64} {
  func.func @_actor_kernel(%arg0: i32, %arg1: memref<8x16xf32, #tpu.memory_space<vmem>>, %arg2: memref<16x32xbf16, #tpu.memory_space<vmem>>, %arg3: memref<1x32xf32, #tpu.memory_space<vmem>>, %arg4: memref<32x32xbf16, #tpu.memory_space<vmem>>, %arg5: memref<1x32xf32, #tpu.memory_space<vmem>>, %arg6: memref<32x128xbf16, #tpu.memory_space<vmem>>, %arg7: memref<1x128xf32, #tpu.memory_space<vmem>>, %arg8: memref<8x128xf32, #tpu.memory_space<vmem>>) attributes {dimension_semantics = [#tpu.dimension_semantics<parallel>], iteration_bounds = array<i64: 1>, scalar_prefetch = 0 : i64, scratch_operands = 0 : i64, tpu.core_type = #tpu.core_type<tc>, window_params = [{transform_indices = @transform_0, window_bounds = array<i64: 8, 16>}, {pipeline_mode = #tpu.pipeline_mode<synchronous>, transform_indices = @transform_1, window_bounds = array<i64: 16, 32>}, {pipeline_mode = #tpu.pipeline_mode<synchronous>, transform_indices = @transform_2, window_bounds = array<i64: 1, 32>}, {pipeline_mode = #tpu.pipeline_mode<synchronous>, transform_indices = @transform_3, window_bounds = array<i64: 32, 32>}, {pipeline_mode = #tpu.pipeline_mode<synchronous>, transform_indices = @transform_4, window_bounds = array<i64: 1, 32>}, {pipeline_mode = #tpu.pipeline_mode<synchronous>, transform_indices = @transform_5, window_bounds = array<i64: 32, 128>}, {pipeline_mode = #tpu.pipeline_mode<synchronous>, transform_indices = @transform_6, window_bounds = array<i64: 1, 128>}, {transform_indices = @transform_7, window_bounds = array<i64: 8, 128>}]} {
    %c0 = arith.constant 0 : index
    %c0_0 = arith.constant 0 : index
    %0 = vector.load %arg1[%c0, %c0_0] : memref<8x16xf32, #tpu.memory_space<vmem>>, vector<8x16xf32>
    %1 = arith.truncf %0 : vector<8x16xf32> to vector<8x16xbf16>
    %c0_1 = arith.constant 0 : index
    %c0_2 = arith.constant 0 : index
    %2 = vector.load %arg2[%c0_1, %c0_2] : memref<16x32xbf16, #tpu.memory_space<vmem>>, vector<16x32xbf16>
    %cst = arith.constant dense<0.000000e+00> : vector<8x32xf32>
    %3 = tpu.matmul %1, %2, %cst {dimension_numbers = #tpu.dot_dimension_numbers<[1], [0], [0], [1], [0, 0, 1, 1], [], []>} : vector<8x16xbf16>, vector<16x32xbf16>, vector<8x32xf32> -> vector<8x32xf32>
    %c0_3 = arith.constant 0 : index
    %c0_4 = arith.constant 0 : index
    %4 = vector.load %arg3[%c0_3, %c0_4] : memref<1x32xf32, #tpu.memory_space<vmem>>, vector<1x32xf32>
    %5 = vector.broadcast %4 : vector<1x32xf32> to vector<8x32xf32>
    %6 = arith.addf %3, %5 : vector<8x32xf32>
    %cst_5 = arith.constant 0.000000e+00 : f32
    %7 = vector.broadcast %cst_5 : f32 to vector<8x32xf32>
    %8 = arith.maximumf %6, %7 : vector<8x32xf32>
    %9 = arith.truncf %8 : vector<8x32xf32> to vector<8x32xbf16>
    %c0_6 = arith.constant 0 : index
    %c0_7 = arith.constant 0 : index
    %10 = vector.load %arg4[%c0_6, %c0_7] : memref<32x32xbf16, #tpu.memory_space<vmem>>, vector<32x32xbf16>
    %cst_8 = arith.constant dense<0.000000e+00> : vector<8x32xf32>
    %11 = tpu.matmul %9, %10, %cst_8 {dimension_numbers = #tpu.dot_dimension_numbers<[1], [0], [0], [1], [0, 0, 1, 1], [], []>} : vector<8x32xbf16>, vector<32x32xbf16>, vector<8x32xf32> -> vector<8x32xf32>
    %c0_9 = arith.constant 0 : index
    %c0_10 = arith.constant 0 : index
    %12 = vector.load %arg5[%c0_9, %c0_10] : memref<1x32xf32, #tpu.memory_space<vmem>>, vector<1x32xf32>
    %13 = vector.broadcast %12 : vector<1x32xf32> to vector<8x32xf32>
    %14 = arith.addf %11, %13 : vector<8x32xf32>
    %cst_11 = arith.constant 0.000000e+00 : f32
    %15 = vector.broadcast %cst_11 : f32 to vector<8x32xf32>
    %16 = arith.maximumf %14, %15 : vector<8x32xf32>
    %17 = arith.truncf %16 : vector<8x32xf32> to vector<8x32xbf16>
    %c0_12 = arith.constant 0 : index
    %c0_13 = arith.constant 0 : index
    %18 = vector.load %arg6[%c0_12, %c0_13] : memref<32x128xbf16, #tpu.memory_space<vmem>>, vector<32x128xbf16>
    %cst_14 = arith.constant dense<0.000000e+00> : vector<8x128xf32>
    %19 = tpu.matmul %17, %18, %cst_14 {dimension_numbers = #tpu.dot_dimension_numbers<[1], [0], [0], [1], [0, 0, 1, 1], [], []>} : vector<8x32xbf16>, vector<32x128xbf16>, vector<8x128xf32> -> vector<8x128xf32>
    %c0_15 = arith.constant 0 : index
    %c0_16 = arith.constant 0 : index
    %20 = vector.load %arg7[%c0_15, %c0_16] : memref<1x128xf32, #tpu.memory_space<vmem>>, vector<1x128xf32>
    %21 = vector.broadcast %20 : vector<1x128xf32> to vector<8x128xf32>
    %22 = arith.addf %19, %21 : vector<8x128xf32>
    %23 = math.tanh %22 : vector<8x128xf32>
    %cst_17 = arith.constant 2.000000e+00 : f32
    %24 = vector.broadcast %cst_17 : f32 to vector<8x128xf32>
    %25 = arith.mulf %24, %23 : vector<8x128xf32>
    %c0_18 = arith.constant 0 : index
    %c0_19 = arith.constant 0 : index
    %26 = vector.load %arg8[%c0_18, %c0_19] : memref<8x128xf32, #tpu.memory_space<vmem>>, vector<8x128xf32>
    tpu.vector_store %arg8[%c0_18, %c0_19], %25 {strides = array<i32>} : memref<8x128xf32, #tpu.memory_space<vmem>>, vector<8x128xf32>,
    return
  }
  func.func @transform_0(%arg0: i32) -> (i32, i32) {
    %c0_i32 = arith.constant 0 : i32
    %c0_i32_0 = arith.constant 0 : i32
    return %arg0, %c0_i32 : i32, i32
  }
  func.func @transform_1(%arg0: i32) -> (i32, i32) {
    %c0_i32 = arith.constant 0 : i32
    %c0_i32_0 = arith.constant 0 : i32
    %c0_i32_1 = arith.constant 0 : i32
    return %c0_i32, %c0_i32_0 : i32, i32
  }
  func.func @transform_2(%arg0: i32) -> (i32, i32) {
    %c0_i32 = arith.constant 0 : i32
    %c0_i32_0 = arith.constant 0 : i32
    %c0_i32_1 = arith.constant 0 : i32
    return %c0_i32, %c0_i32_0 : i32, i32
  }
  func.func @transform_3(%arg0: i32) -> (i32, i32) {
    %c0_i32 = arith.constant 0 : i32
    %c0_i32_0 = arith.constant 0 : i32
    %c0_i32_1 = arith.constant 0 : i32
    return %c0_i32, %c0_i32_0 : i32, i32
  }
  func.func @transform_4(%arg0: i32) -> (i32, i32) {
    %c0_i32 = arith.constant 0 : i32
    %c0_i32_0 = arith.constant 0 : i32
    %c0_i32_1 = arith.constant 0 : i32
    return %c0_i32, %c0_i32_0 : i32, i32
  }
  func.func @transform_5(%arg0: i32) -> (i32, i32) {
    %c0_i32 = arith.constant 0 : i32
    %c0_i32_0 = arith.constant 0 : i32
    %c0_i32_1 = arith.constant 0 : i32
    return %c0_i32, %c0_i32_0 : i32, i32
  }
  func.func @transform_6(%arg0: i32) -> (i32, i32) {
    %c0_i32 = arith.constant 0 : i32
    %c0_i32_0 = arith.constant 0 : i32
    %c0_i32_1 = arith.constant 0 : i32
    return %c0_i32, %c0_i32_0 : i32, i32
  }
  func.func @transform_7(%arg0: i32) -> (i32, i32) {
    %c0_i32 = arith.constant 0 : i32
    %c0_i32_0 = arith.constant 0 : i32
    return %arg0, %c0_i32 : i32, i32
  }
}

</mosaic_0001>

<bundles_post_ra>
// kernel: tpu_custom_call.1
= control target key start
LH: loop header
LB: loop body
LE: loop exit
PB: predicated region body
PF: predicated region fallthrough
CT: control target
= control target key end

     0   :  { %12 = vsyncpa [#allocation3], 0  ;;  %s546_s0 = inlined_call_operand.hbm [shape: f32[8,16], index: 0, kind: input, shape index: {}]   ;;  %s547_s1 = inlined_call_operand.hbm [shape: bf16[16,32], index: 1, kind: input, shape index: {}]   ;;  %s548_s2 = inlined_call_operand.vmem [shape: f32[1,32], index: 2, kind: input, shape index: {}]   ;;  %s549_s3 = inlined_call_operand.hbm [shape: bf16[32,32], index: 3, kind: input, shape index: {}]   ;;  %s550_s4 = inlined_call_operand.vmem [shape: f32[1,32], index: 4, kind: input, shape index: {}]   ;;  %s551_s5 = inlined_call_operand.hbm [shape: bf16[32,128], index: 5, kind: input, shape index: {}]   ;;  %s552_s6 = inlined_call_operand.vmem [shape: f32[1,128], index: 6, kind: input, shape index: {}]   ;;  %s553_s7 = inlined_call_operand.hbm [shape: f32[8,128], index: 7, kind: output, shape index: {}]  }
   0x1   :  { %13 = vsyncpa [#allocation6], 0 }
   0x2   :  { %14 = vsyncpa [#allocation9], 0 }
   0x3   :  { %15 = vsyncpa [#allocation4], 0  ;;  %s464_s24 = smov [#allocation5]  }
   0x4   :  { %s31_s25 = sshll.u32 %s464_s24, 4  ;;  %s32_s25 = int_to_ptr.vmem [resolvable:$true] %s31_s25 }
   0x5   :  { %s364_s26 = scalar_lea.vmem %s32_s25, 128  ;;  %p369_p1 = scmp.lt.s32.totalorder %s32_s25, %s32_s25 }
   0x6   :  { %p365_p0 = scmp.ne.s32.totalorder %s32_s25, %s364_s26  ;;  %p370_p2 = scmp.lt.s32.totalorder %s364_s26, %s364_s26 }
   0x8   :  { %p371_p3 = por %p370_p2, %p369_p1 }
   0xa   :  { %p372_p4 = pnand %p371_p3, %p365_p0 }
   0xc   :  { %375 = shalt.err (!%p372_p4)
}
   0xd   :  { %s465_s27 = smov 64   ;;  %s466_s28 = smov 4  }
   0xe   :  { %37 = dma.hbm_to_vmem [thread:$0]  %s547_s1, 128, %s32_s25, [#allocation6], %s465_s27, %s465_s27, %s466_s28  }
   0xf   :  { %s467_s8 = smov [#allocation2]   ;;  %s468_s10 = smov [#allocation7]  }
  0x10   :  { %s22_s9 = sshll.u32 %s467_s8, 4  ;;  %s45_s11 = sshll.u32 %s468_s10, 4  ;;  %s23_s9 = int_to_ptr.vmem [resolvable:$true] %s22_s9  ;;  %s46_s11 = int_to_ptr.vmem [resolvable:$true] %s45_s11 }
  0x11   :  { %s384_s12 = scalar_lea.vmem %s23_s9, 128  ;;  %p389_p6 = scmp.lt.s32.totalorder %s23_s9, %s23_s9 }
  0x12   :  { %p385_p5 = scmp.ne.s32.totalorder %s23_s9, %s384_s12  ;;  %p390_p7 = scmp.lt.s32.totalorder %s384_s12, %s384_s12 }
  0x14   :  { %p391_p8 = por %p390_p7, %p389_p6 }
  0x16   :  { %p392_p9 = pnand %p391_p8, %p385_p5 }
  0x18   :  { %395 = shalt.err (!%p392_p9)
}
  0x19   :  { %25 = dma.hbm_to_vmem [thread:$0]  %s546_s0, 128, %s23_s9, [#allocation3]  }
  0x1a   :  { %s404_s15 = scalar_lea.vmem %s46_s11, 256  ;;  %p409_p11 = scmp.lt.s32.totalorder %s46_s11, %s46_s11 }
  0x1b   :  { %p405_p10 = scmp.ne.s32.totalorder %s46_s11, %s404_s15  ;;  %p410_p12 = scmp.lt.s32.totalorder %s404_s15, %s404_s15 }
  0x1d   :  { %p411_p13 = por %p410_p12, %p409_p11 }
  0x1f   :  { %p412_p0 = pnand %p411_p13, %p405_p10 }
  0x21   :  { %415 = shalt.err (!%p412_p0)
}
  0x22   :  { %51 = dma.hbm_to_vmem [thread:$0]  %s549_s3, 256, %s46_s11, [#allocation6], %s465_s27, %s465_s27, %s466_s28  }
  0x23   :  { %s469_s17 = smov [#allocation8]  }
  0x24   :  { %s59_s18 = sshll.u32 %s469_s17, 4  ;;  %s60_s18 = int_to_ptr.vmem [resolvable:$true] %s59_s18 }
  0x25   :  { %s424_s19 = scalar_lea.vmem %s60_s18, 256  ;;  %p429_p2 = scmp.lt.s32.totalorder %s60_s18, %s60_s18 }
  0x26   :  { %p425_p1 = scmp.ne.s32.totalorder %s60_s18, %s424_s19  ;;  %p430_p3 = scmp.lt.s32.totalorder %s424_s19, %s424_s19 }
  0x28   :  { %p431_p4 = por %p430_p3, %p429_p2 }
  0x2a   :  { %p432_p5 = pnand %p431_p4, %p425_p1 }
  0x2c   :  { %435 = shalt.err (!%p432_p5)
}
  0x2d   :  { %65 = dma.hbm_to_vmem [thread:$0]  %s551_s5, 256, %s60_s18, [#allocation9], %s465_s27, %s465_s27, %s466_s28  }
  0x2e   :  { %456 = dma.done.wait [#allocation3], 128  }
  0x2f   :  { %457 = vsyncadd [#allocation3], 4294967168 }
  0x30   :  { %458 = dma.done.wait [#allocation6], 384  }
  0x31   :  { %459 = vsyncadd [#allocation6], 4294966912 }
  0x32   :  { %460 = dma.done.wait [#allocation9], 256  }
  0x33   :  { %461 = vsyncadd [#allocation9], 4294967040  ;;  %v470_v0 = vmov 0.0   ;;  %vm471_vm0 = vmmov 0   ;;  %v349_v1 = vld [vmem:[#allocation5] sm:$0xff]   ;;  %v81_v2 = vld [vmem:[#allocation2] sm:$0xff] }
  0x34   :  { %318 = vmatprep.subr.bf16.mxu0 %v470_v0  ;;  %320 = vmatprep.mubr.msk.bf16.mxu0 %vm471_vm0, %v470_v0  ;;  %vm98_vm1 = vcmask 130048   ;;  %v82_v3 = vpack.c.bf16 %v81_v2, %v81_v2  ;;  %v350_v4 = vld [vmem:[#allocation7 + $0x8] sm:$0xff]   ;;  %v351_v5 = vld [vmem:[#allocation7] sm:$0xff]   ;;  %v352_v6 = vld [vmem:[#allocation8 + $0x8] sm:$0xff]   ;;  %vm167_vm2 = vcmask 261120   ;;  %s472_s24 = smov [#allocation10]  }
  0x35   :  { %324 = vmatprep.subr.bf16.mxu1 %v470_v0  ;;  %328 = vmatprep.mubr.msk.bf16.mxu1 %vm471_vm0, %v470_v0  ;;  %v299_v7 = vld [vmem:[%s548_s2] ss:$0 sm:$0xff] }
  0x36   :  { %319 = vmatpush3.bf16.msra.mxu0 %v349_v1  ;;  %325 = vmatpush3.bf16.msra.mxu1 %v350_v4  ;;  %v353_v15 = vld [vmem:[#allocation8] sm:$0xff]  }
  0x37   :  { %332 = vmatprep.subr.bf16.mxu0 %v470_v0  ;;  %326 = vmatprep.subr.bf16.mxu1 %v470_v0  ;;  %v302_v16 = vld [vmem:[%s550_s4] ss:$0 sm:$0xff]  ;;  %s288_s4 = sshll.u32 %s472_s24, 4  ;;  %s289_s4 = int_to_ptr.vmem [resolvable:$true] %s288_s4 }
  0x38   :  { %v306_v24 = vld [vmem:[%s552_s6] ss:$0 sm:$0xff]  ;;  %s436_s25 = scalar_lea.vmem %s289_s4, 128  ;;  %p441_p7 = scmp.lt.s32.totalorder %s289_s4, %s289_s4 }
  0x39   :  { %321 = vmatmul.mubr.msk.bf16.vlgmr.msra.gmra.mxu0 %vm98_vm1, %v82_v3  ;;  %p437_p6 = scmp.ne.s32.totalorder %s289_s4, %s436_s25  ;;  %p442_p8 = scmp.lt.s32.totalorder %s436_s25, %s436_s25 }
  0x3a   :  { %336 = vmatprep.mubr.msk.bf16.mxu0 %vm471_vm0, %v470_v0  ;;  %327 = vmatpush3.bf16.msra.mxu1 %v351_v5 }
  0x3b   :  { %333 = vmatpush3.bf16.msra.mxu0 %v352_v6  ;;  %p443_p9 = por %p442_p8, %p441_p7 }
  0x3c   :  { %334 = vmatprep.subr.bf16.mxu0 %v470_v0 }
  0x3d   :  { %p444_p10 = pnand %p443_p9, %p437_p6 }
  0x3f   :  { %335 = vmatpush3.bf16.msra.mxu0 %v353_v15 }
  0xf9   :  { %v136_v8 = vpop.f32.mrf.mxu0 }
  0xfa   :  { %v137_v9 = vadd.f32 %v299_v7, %v136_v8 }
  0xfb   :  { %v322_v10 = vpop.f32.mrf.mxu0 }
  0xfc   :  { %v142_v11 = vmax.f32 %v137_v9, 0.0 }
  0xfd   :  { %v139_v12 = vpop.f32.mrf.mxu0 }
  0xfe   :  { %v143_v13 = vpack.c.bf16 %v142_v11, %v142_v11 }
  0xff   :  { %v323_v14 = vpop.f32.mrf.mxu0 }
 0x100   :  { %329 = vmatmul.mubr.msk.bf16.vlgmr.msra.gmra.mxu1 %vm167_vm2, %v143_v13 }
 0x1c0   :  { %v205_v17 = vpop.f32.mrf.mxu1 }
 0x1c1   :  { %v206_v18 = vadd.f32 %v302_v16, %v205_v17 }
 0x1c2   :  { %v330_v19 = vpop.f32.mrf.mxu1 }
 0x1c3   :  { %v211_v20 = vmax.f32 %v206_v18, 0.0 }
 0x1c4   :  { %v208_v21 = vpop.f32.mrf.mxu1 }
 0x1c5   :  { %v212_v22 = vpack.c.bf16 %v211_v20, %v211_v20 }
 0x1c6   :  { %v331_v23 = vpop.f32.mrf.mxu1 }
 0x1c7   :  { %337 = vmatmul.mubr.msk.bf16.vlgmr.msra.gmra.mxu0 %vm167_vm2, %v212_v22 }
 0x287   :  { %v273_v25 = vpop.f32.mrf.mxu0 }
 0x288   :  { %v274_v26 = vadd.f32 %v306_v24, %v273_v25 }
 0x289   :  { %v338_v27 = vpop.f32.mrf.mxu0 }
 0x28a   :  { %354 = vtanh.f32 %v274_v26 }
 0x28b   :  { %v276_v28 = vpop.f32.mrf.mxu0 }
 0x28d   :  { %v339_v29 = vpop.f32.mrf.mxu0 }
 0x297   :  { %v355_v30 = vpop.eup %354 }
 0x298   :  { %v280_v31 = vmul.f32 2.0, %v355_v30 }
 0x29a   :  { %281 = vst [vmem:[#allocation10] sm:$0xff] %v280_v31 }
 0x29b   :  { %447 = shalt.err (!%p444_p10)
}
 0x29c   :  { %291 = dma.vmem_to_hbm [thread:$0]  %s289_s4, 128, %s553_s7, [#allocation4]  }
 0x29d   :  { %462 = dma.done.wait [#allocation4], 128  }
 0x29e   :  { %463 = vsyncadd [#allocation4], 4294967168 }
 0x29f   :  { %295 = vsyncpa [#allocation3], 1 }
 0x2a0   :  { %296 = vsyncpa [#allocation6], 1 }
 0x2a1   :  { %297 = vsyncpa [#allocation9], 1 }
 0x2a2   :  { %298 = vsyncpa [#allocation4], 1 }

</bundles_post_ra>
